<compile_context>
chip_gen: v7x
topology: tpu7x:2x2x1
jax: 0.10.0
libtpu: 0.0.40
codegen_flags: <defaults>
</compile_context>

<pallas_src>
import jax
import jax.numpy as jnp
from jax.experimental import pallas as pl
from jax.experimental.pallas import tpu as pltpu


def fc_kernel(x_ref, w1_ref, b1_ref, w2_ref, b2_ref, o_ref):
    # Two MXU matmuls (bf16 in, f32 accumulate) + VPU bias-add / ReLU, fused.
    h = jnp.dot(x_ref[...], w1_ref[...], preferred_element_type=jnp.float32)
    h = jnp.maximum(h + b1_ref[...], 0.0)                     # bias + ReLU (f32)
    y = jnp.dot(h.astype(w2_ref.dtype), w2_ref[...],
                preferred_element_type=jnp.float32)
    o_ref[...] = (y + b2_ref[...]).astype(o_ref.dtype)


def _round_up(n, m):
    return ((n + m - 1) // m) * m


def fc_forward(x, w1, b1, w2, b2, *, block_b=128, compute_dtype=jnp.bfloat16):
    """y = relu(x @ w1 + b1) @ w2 + b2."""
    B, in_ch = x.shape
    med_ch = w1.shape[1]
    out_ch = w2.shape[1]
    out_dtype = x.dtype

    # Lane-dense output: pad the final feature dim to a multiple of 128 so the
    # output stores are full-width vst instead of masked vst.msk.
    out_p = _round_up(out_ch, 128)
    if out_p != out_ch:
        w2 = jnp.pad(w2, ((0, 0), (0, out_p - out_ch)))
        b2 = jnp.pad(b2, ((0, 0), (0, out_p - out_ch)))

    # bf16 MXU feeds, f32 biases / accumulation.
    xc = x.astype(compute_dtype)
    w1c = w1.astype(compute_dtype)
    w2c = w2.astype(compute_dtype)
    b1f = b1.astype(jnp.float32)
    b2f = b2.astype(jnp.float32)

    cost = pl.CostEstimate(
        flops=2 * B * (in_ch * med_ch + med_ch * out_p),
        transcendentals=0,
        bytes_accessed=(xc.size * 2 + w1c.size * 2 + w2c.size * 2
                        + b1f.size * 4 + b2f.size * 4 + B * out_p * 4))

    if B <= block_b:
        # Single-block problem (<100 KiB working set): no grid, no index_maps,
        # everything lives in VMEM for the whole call.
        b_p = _round_up(B, 8)
        if b_p != B:
            xc = jnp.pad(xc, ((0, b_p - B), (0, 0)))
        vmem = pl.BlockSpec(memory_space=pltpu.MemorySpace.VMEM)
        out = pl.pallas_call(
            fc_kernel,
            out_shape=jax.ShapeDtypeStruct((b_p, out_p), out_dtype),
            in_specs=[vmem] * 5,
            out_specs=vmem,
            cost_estimate=cost,
        )(xc, w1c, b1f, w2c, b2f)
    else:
        # Stream batch tiles through the double-buffered pipeline; weights and
        # biases return block (0, 0) every step -> DMA'd once, VMEM-resident.
        b_p = _round_up(B, block_b)
        if b_p != B:
            xc = jnp.pad(xc, ((0, b_p - B), (0, 0)))
        out = pl.pallas_call(
            fc_kernel,
            out_shape=jax.ShapeDtypeStruct((b_p, out_p), out_dtype),
            grid=(b_p // block_b,),
            in_specs=[
                pl.BlockSpec((block_b, in_ch), lambda i: (i, 0)),
                pl.BlockSpec((in_ch, med_ch), lambda i: (0, 0)),
                pl.BlockSpec((1, med_ch), lambda i: (0, 0)),
                pl.BlockSpec((med_ch, out_p), lambda i: (0, 0)),
                pl.BlockSpec((1, out_p), lambda i: (0, 0)),
            ],
            out_specs=pl.BlockSpec((block_b, out_p), lambda i: (i, 0)),
            compiler_params=pltpu.CompilerParams(
                # Batch axis is fully independent -> megacore-shardable
                # (critical on v7x's 2 TensorCores; harmless on v5e/v6e).
                dimension_semantics=("parallel",)),
            cost_estimate=cost,
        )(xc, w1c, b1f, w2c, b2f)
        # TODO(synk): when scaling med_ch/out_ch, re-derive block_b against
        # v7x's 64 MiB VMEM and prefer 256-wide N tiles for the v6e/v7x MXU.

    return out[:B, :out_ch]


def init_fc_params(key, in_ch, med_ch, out_ch, dtype=jnp.float32):
    # Deterministic synthetic init (PyTorch-default-like uniform bounds).
    k1, k2, k3, k4 = jax.random.split(key, 4)
    bound1 = 1.0 / jnp.sqrt(in_ch)
    bound2 = 1.0 / jnp.sqrt(med_ch)
    w1 = jax.random.uniform(k1, (in_ch, med_ch), dtype, -bound1, bound1)
    b1 = jax.random.uniform(k2, (1, med_ch),     dtype, -bound1, bound1)
    w2 = jax.random.uniform(k3, (med_ch, out_ch), dtype, -bound2, bound2)
    b2 = jax.random.uniform(k4, (1, out_ch),      dtype, -bound2, bound2)
    return w1, b1, w2, b2


if __name__ == "__main__":
    in_ch, med_ch, out_ch = 32, 64, 16

    key = jax.random.PRNGKey(0)
    kx, kp = jax.random.split(key)
    w1, b1, w2, b2 = init_fc_params(kp, in_ch, med_ch, out_ch)

    def ref_fn(xb):
        return jnp.maximum(xb @ w1 + b1, 0.0) @ w2 + b2

    # batch=8 exercises the no-grid VMEM path; batch=256 the batch-tiled path.
    for batch in (8, 256):
        xb = jax.random.normal(jax.random.fold_in(kx, batch),
                               (batch, in_ch), jnp.float32)
        out = jax.block_until_ready(fc_forward(xb, w1, b1, w2, b2))
        ref = ref_fn(xb)
        assert out.shape == (batch, out_ch)
        # bf16 MXU feeds -> compare to the f32 reference with bf16 tolerance.
        assert jnp.allclose(out, ref, atol=5e-2, rtol=5e-2)

    print("KERNEL_OK")
</pallas_src>

<mosaic_0001>
module attributes {stable_mosaic.version = 11 : i64} {
  func.func @fc_kernel(%arg0: memref<8x32xbf16, #tpu.memory_space<vmem>>, %arg1: memref<32x64xbf16, #tpu.memory_space<vmem>>, %arg2: memref<1x64xf32, #tpu.memory_space<vmem>>, %arg3: memref<64x128xbf16, #tpu.memory_space<vmem>>, %arg4: memref<1x128xf32, #tpu.memory_space<vmem>>, %arg5: memref<8x128xf32, #tpu.memory_space<vmem>>) attributes {dimension_semantics = [], scalar_prefetch = 0 : i64, scratch_operands = 0 : i64, tpu.core_type = #tpu.core_type<tc>} {
    %c0 = arith.constant 0 : index
    %c0_0 = arith.constant 0 : index
    %0 = vector.load %arg0[%c0, %c0_0] : memref<8x32xbf16, #tpu.memory_space<vmem>>, vector<8x32xbf16>
    %c0_1 = arith.constant 0 : index
    %c0_2 = arith.constant 0 : index
    %1 = vector.load %arg1[%c0_1, %c0_2] : memref<32x64xbf16, #tpu.memory_space<vmem>>, vector<32x64xbf16>
    %cst = arith.constant dense<0.000000e+00> : vector<8x64xf32>
    %2 = tpu.matmul %0, %1, %cst {dimension_numbers = #tpu.dot_dimension_numbers<[1], [0], [0], [1], [0, 0, 1, 1], [], []>} : vector<8x32xbf16>, vector<32x64xbf16>, vector<8x64xf32> -> vector<8x64xf32>
    %c0_3 = arith.constant 0 : index
    %c0_4 = arith.constant 0 : index
    %3 = vector.load %arg2[%c0_3, %c0_4] : memref<1x64xf32, #tpu.memory_space<vmem>>, vector<1x64xf32>
    %4 = vector.broadcast %3 : vector<1x64xf32> to vector<8x64xf32>
    %5 = arith.addf %2, %4 : vector<8x64xf32>
    %cst_5 = arith.constant 0.000000e+00 : f32
    %6 = vector.broadcast %cst_5 : f32 to vector<8x64xf32>
    %7 = arith.maximumf %5, %6 : vector<8x64xf32>
    %8 = arith.truncf %7 : vector<8x64xf32> to vector<8x64xbf16>
    %c0_6 = arith.constant 0 : index
    %c0_7 = arith.constant 0 : index
    %9 = vector.load %arg3[%c0_6, %c0_7] : memref<64x128xbf16, #tpu.memory_space<vmem>>, vector<64x128xbf16>
    %cst_8 = arith.constant dense<0.000000e+00> : vector<8x128xf32>
    %10 = tpu.matmul %8, %9, %cst_8 {dimension_numbers = #tpu.dot_dimension_numbers<[1], [0], [0], [1], [0, 0, 1, 1], [], []>} : vector<8x64xbf16>, vector<64x128xbf16>, vector<8x128xf32> -> vector<8x128xf32>
    %c0_9 = arith.constant 0 : index
    %c0_10 = arith.constant 0 : index
    %11 = vector.load %arg4[%c0_9, %c0_10] : memref<1x128xf32, #tpu.memory_space<vmem>>, vector<1x128xf32>
    %12 = vector.broadcast %11 : vector<1x128xf32> to vector<8x128xf32>
    %13 = arith.addf %10, %12 : vector<8x128xf32>
    %c0_11 = arith.constant 0 : index
    %c0_12 = arith.constant 0 : index
    %14 = vector.load %arg5[%c0_11, %c0_12] : memref<8x128xf32, #tpu.memory_space<vmem>>, vector<8x128xf32>
    tpu.vector_store %arg5[%c0_11, %c0_12], %13 {strides = array<i32>} : memref<8x128xf32, #tpu.memory_space<vmem>>, vector<8x128xf32>,
    return
  }
}

</mosaic_0001>

<bundles_post_ra>
// kernel: tpu_custom_call.1
= control target key start
LH: loop header
LB: loop body
LE: loop exit
PB: predicated region body
PF: predicated region fallthrough
CT: control target
= control target key end

     0   :  { %10 = vsyncpa [#allocation3], 0  ;;  %s475_s0 = inlined_call_operand.hbm [shape: bf16[8,32], index: 0, kind: input, shape index: {}]   ;;  %s476_s1 = inlined_call_operand.hbm [shape: bf16[32,64], index: 1, kind: input, shape index: {}]   ;;  %s477_s2 = inlined_call_operand.vmem [shape: f32[1,64], index: 2, kind: input, shape index: {}]   ;;  %s478_s3 = inlined_call_operand.hbm [shape: bf16[64,128], index: 3, kind: input, shape index: {}]   ;;  %s479_s4 = inlined_call_operand.vmem [shape: f32[1,128], index: 4, kind: input, shape index: {}]   ;;  %s480_s5 = inlined_call_operand.hbm [shape: f32[8,128], index: 5, kind: output, shape index: {}]  }
   0x1   :  { %11 = vsyncpa [#allocation6], 0 }
   0x2   :  { %12 = vsyncpa [#allocation4], 0  ;;  %s377_s18 = smov [#allocation5]   ;;  %s283_s22 = scalar_lea.hbm %s476_s1, 256 }
   0x3   :  { %s28_s19 = sshll.u32 %s377_s18, 4  ;;  %p284_p0 = scmp.ne.s32.totalorder %s476_s1, %s283_s22  ;;  %s29_s19 = int_to_ptr.vmem [resolvable:$true] %s28_s19 }
   0x4   :  { %p287_p1 = scmp.lt.u32.totalorder %s283_s22, %s476_s1 }
   0x6   :  { %p289_p2 = pnand %p287_p1, %p284_p0 }
   0x8   :  { %292 = shalt.err (!%p289_p2)
}
   0x9   :  { %s293_s27 = scalar_lea.vmem %s29_s19, 256  ;;  %p298_p4 = scmp.lt.s32.totalorder %s29_s19, %s29_s19 }
   0xa   :  { %p294_p3 = scmp.ne.s32.totalorder %s29_s19, %s293_s27  ;;  %p299_p5 = scmp.lt.s32.totalorder %s293_s27, %s293_s27 }
   0xc   :  { %p300_p6 = por %p299_p5, %p298_p4 }
   0xe   :  { %p301_p7 = pnand %p300_p6, %p294_p3 }
  0x10   :  { %304 = shalt.err (!%p301_p7)
}
  0x11   :  { %s378_s28 = smov 64   ;;  %s379_s29 = smov 4  }
  0x12   :  { %34 = dma.hbm_to_vmem [thread:$0]  %s476_s1, 256, %s29_s19, [#allocation6], %s378_s28, %s378_s28, %s379_s29  }
  0x13   :  { %s380_s7 = smov [#allocation2]   ;;  %s381_s9 = smov [#allocation7]  }
  0x14   :  { %s19_s8 = sshll.u32 %s380_s7, 4  ;;  %s42_s10 = sshll.u32 %s381_s9, 4  ;;  %s20_s8 = int_to_ptr.vmem [resolvable:$true] %s19_s8  ;;  %s43_s10 = int_to_ptr.vmem [resolvable:$true] %s42_s10 }
  0x15   :  { %s305_s13 = scalar_lea.hbm %s475_s0, 64 }
  0x16   :  { %p306_p8 = scmp.ne.s32.totalorder %s475_s0, %s305_s13  ;;  %p309_p9 = scmp.lt.u32.totalorder %s305_s13, %s475_s0 }
  0x18   :  { %p311_p10 = pnand %p309_p9, %p306_p8 }
  0x1a   :  { %314 = shalt.err (!%p311_p10)
}
  0x1b   :  { %s315_s1 = scalar_lea.vmem %s20_s8, 64  ;;  %p320_p12 = scmp.lt.s32.totalorder %s20_s8, %s20_s8 }
  0x1c   :  { %p316_p11 = scmp.ne.s32.totalorder %s20_s8, %s315_s1  ;;  %p321_p13 = scmp.lt.s32.totalorder %s315_s1, %s315_s1 }
  0x1e   :  { %p322_p0 = por %p321_p13, %p320_p12 }
  0x20   :  { %p323_p1 = pnand %p322_p0, %p316_p11 }
  0x22   :  { %326 = shalt.err (!%p323_p1)
}
  0x23   :  { %22 = dma.hbm_to_vmem [thread:$0]  %s475_s0, 64, %s20_s8, [#allocation3]  }
  0x24   :  { %s327_s22 = scalar_lea.hbm %s478_s3, 512 }
  0x25   :  { %p328_p2 = scmp.ne.s32.totalorder %s478_s3, %s327_s22  ;;  %p331_p3 = scmp.lt.u32.totalorder %s327_s22, %s478_s3 }
  0x27   :  { %p333_p4 = pnand %p331_p3, %p328_p2 }
  0x29   :  { %336 = shalt.err (!%p333_p4)
}
  0x2a   :  { %s337_s27 = scalar_lea.vmem %s43_s10, 512  ;;  %p342_p6 = scmp.lt.s32.totalorder %s43_s10, %s43_s10 }
  0x2b   :  { %p338_p5 = scmp.ne.s32.totalorder %s43_s10, %s337_s27  ;;  %p343_p7 = scmp.lt.s32.totalorder %s337_s27, %s337_s27 }
  0x2d   :  { %p344_p8 = por %p343_p7, %p342_p6 }
  0x2f   :  { %p345_p9 = pnand %p344_p8, %p338_p5 }
  0x31   :  { %348 = shalt.err (!%p345_p9)
}
  0x32   :  { %48 = dma.hbm_to_vmem [thread:$0]  %s478_s3, 512, %s43_s10, [#allocation6], %s378_s28, %s378_s28, %s379_s29  }
  0x33   :  { %371 = dma.done.wait [#allocation3], 64  }
  0x34   :  { %372 = vsyncadd [#allocation3], 4294967232 }
  0x35   :  { %373 = dma.done.wait [#allocation6], 768  }
  0x36   :  { %374 = vsyncadd [#allocation6], 4294966528  ;;  %v382_v0 = vmov 0.0   ;;  %vm383_vm0 = vmmov 0   ;;  %v277_v1 = vld [vmem:[#allocation5] sm:$0xff]   ;;  %v278_v2 = vld [vmem:[#allocation5 + $0x8] sm:$0xff]  }
  0x37   :  { %249 = vmatprep.subr.bf16.mxu0 %v382_v0  ;;  %253 = vmatprep.mubr.msk.bf16.mxu0 %vm383_vm0, %v382_v0  ;;  %v279_v3 = vld [vmem:[#allocation7] sm:$0xff]   ;;  %v280_v4 = vld [vmem:[#allocation7 + $0x8] sm:$0xff]   ;;  %vm85_vm1 = vcmask 261120   ;;  %v281_v6 = vld [vmem:[#allocation7 + $0x10] sm:$0xff]   ;;  %vm170_vm2 = vcmask 523264   ;;  %s384_s7 = smov [#allocation8]  }
  0x38   :  { %257 = vmatprep.subr.bf16.mxu1 %v382_v0  ;;  %265 = vmatprep.mubr.msk.bf16.mxu1 %vm383_vm0, %v382_v0  ;;  %v61_v5 = vld [vmem:[#allocation2] sm:$0xf]  ;;  %v282_v7 = vld [vmem:[#allocation7 + $0x18] sm:$0xff]   ;;  %s221_s8 = sshll.u32 %s384_s7, 4  ;;  %s222_s8 = int_to_ptr.vmem [resolvable:$true] %s221_s8 }
  0x39   :  { %250 = vmatpush3.bf16.msra.mxu0 %v277_v1  ;;  %258 = vmatpush3.bf16.msra.mxu1 %v279_v3  ;;  %v231_v8 = vld [vmem:[%s477_s2] ss:$0 sm:$0xff]  ;;  %s349_s2 = scalar_lea.vmem %s222_s8, 128  ;;  %p354_p11 = scmp.lt.s32.totalorder %s222_s8, %s222_s8 }
  0x3a   :  { %251 = vmatprep.subr.bf16.mxu0 %v382_v0  ;;  %259 = vmatprep.subr.bf16.mxu1 %v382_v0  ;;  %v235_v16 = vld [vmem:[%s479_s4] ss:$0 sm:$0xff]  ;;  %p350_p10 = scmp.ne.s32.totalorder %s222_s8, %s349_s2  ;;  %p355_p12 = scmp.lt.s32.totalorder %s349_s2, %s349_s2 }
  0x3c   :  { %p356_p13 = por %p355_p12, %p354_p11 }
  0x3d   :  { %252 = vmatpush3.bf16.msra.mxu0 %v278_v2  ;;  %260 = vmatpush3.bf16.msra.mxu1 %v280_v4 }
  0x3e   :  { %261 = vmatprep.subr.bf16.mxu1 %v382_v0  ;;  %p357_p0 = pnand %p356_p13, %p350_p10 }
  0x40   :  { %254 = vmatmul.mubr.msk.bf16.vlgmr.msra.gmra.mrb[0].mxu0 %vm85_vm1, %v61_v5 }
  0x41   :  { %262 = vmatpush3.bf16.msra.mxu1 %v281_v6 }
  0x42   :  { %263 = vmatprep.subr.bf16.mxu1 %v382_v0 }
  0x45   :  { %264 = vmatpush3.bf16.msra.mxu1 %v282_v7 }
 0x113   :  { %v123_v9 = vpop.f32.mrb[0].mxu0 }
 0x114   :  { %v124_v10 = vadd.f32 %v231_v8, %v123_v9  ;;  %v255_v11 = vpop.f32.mrb[1].mxu0 }
 0x115   :  { %v126_v12 = vpop.f32.mrb[2].mxu0 }
 0x116   :  { %v129_v13 = vmax.f32 %v124_v10, 0.0  ;;  %v256_v14 = vpop.f32.mrb[3].mxu0 }
 0x118   :  { %v130_v15 = vpack.c.bf16 %v129_v13, %v129_v13 }
 0x11a   :  { %266 = vmatmul.mubr.msk.bf16.vlgmr.msra.gmra.mrb[0].mxu1 %vm170_vm2, %v130_v15 }
 0x1ed   :  { %v208_v17 = vpop.f32.mrb[0].mxu1 }
 0x1ee   :  { %v209_v18 = vadd.f32 %v235_v16, %v208_v17  ;;  %v267_v19 = vpop.f32.mrb[1].mxu1 }
 0x1ef   :  { %v211_v20 = vpop.f32.mrb[2].mxu1 }
 0x1f0   :  { %214 = vst [vmem:[#allocation8] sm:$0xff] %v209_v18  ;;  %v268_v21 = vpop.f32.mrb[3].mxu1 }
 0x1f1   :  { %360 = shalt.err (!%p357_p0)
}
 0x1f2   :  { %s361_s4 = scalar_lea.hbm %s480_s5, 128 }
 0x1f3   :  { %p362_p1 = scmp.ne.s32.totalorder %s480_s5, %s361_s4  ;;  %p365_p2 = scmp.lt.u32.totalorder %s361_s4, %s480_s5 }
 0x1f5   :  { %p367_p3 = pnand %p365_p2, %p362_p1 }
 0x1f7   :  { %370 = shalt.err (!%p367_p3)
}
 0x1f8   :  { %224 = dma.vmem_to_hbm [thread:$0]  %s222_s8, 128, %s480_s5, [#allocation4]  }
 0x1f9   :  { %375 = dma.done.wait [#allocation4], 128  }
 0x1fa   :  { %376 = vsyncadd [#allocation4], 4294967168 }
 0x1fb   :  { %228 = vsyncpa [#allocation3], 1 }
 0x1fc   :  { %229 = vsyncpa [#allocation6], 1 }
 0x1fd   :  { %230 = vsyncpa [#allocation4], 1 }

</bundles_post_ra>
